<compile_context>
chip_gen: v7x
topology: tpu7x:2x2x1
jax: 0.10.0
libtpu: 0.0.40
codegen_flags: <defaults>
</compile_context>

<pallas_src>
import functools

import jax
import jax.numpy as jnp
from jax.experimental import pallas as pl
from jax.experimental.pallas import tpu as pltpu

# The (second, effective) hard-coded embedding constant from the PyTorch forward.
EMBED_CONST = [
    -0.13289509, 0.12309803, 0.158302755, -0.192204535, -0.086660924, 0.71597398,
    1.0904626, -0.077608577, 0.102690511, -0.00938375, -0.019366114, -0.39880861,
    0.020456175, -0.04960794, 0.103562543, -0.208707098, 0.07022235, 0.274018385,
    -0.68806612, -0.02583901, -0.874672735, -0.24366121, 0.073069565, -0.27975573,
    -0.07978519, -0.032591376, -0.4486416, -0.078896705, 0.285401115, -0.95274325,
    0.5663592, -0.1642595,
]

# ----------------------------- shapes -----------------------------
BATCH = 1            # torch-faithful batch size (see NOTE above)
IN_SHAPE = 16        # base MLP input features
BASE_H0 = 32         # base hidden 0
BASE_H1 = 32         # base hidden 1 == base.output_shape
REPR_SHAPE = 32      # representation_shape
EMBED_SHAPE = 32     # embedding_shape (length of the hard-coded embed constant)
APPEND_ACT_H = 32    # append_hidden_shapes_action = [32]
OUT_SHAPE = 8        # output_shape
TASK_IN = 4          # task_input_shape (unused in forward)

# Augmented feature width: 32 hidden units + 1 constant "ones" row (bias) + 7 pad -> 40.
AUG = 40
ONES_ROW = 32        # row index of the constant-1 row in every augmented activation
W_ROWS = 3 * AUG + OUT_SHAPE   # 128 rows: three (40,40) hidden blocks + one (8,40) last block

LANE = 128           # lane width: batch is padded to a multiple of this
MAX_TILE_B = 4096    # default batch-columns per grid step when tiling is needed


def _round_up(n, m):
    return (n + m - 1) // m * m


# ----------------------------- kernel -----------------------------
def _kernel(x_ref, w_ref, o_ref):
    """Feature-major fused MLP: 4 serially-dependent matmuls, biases folded into the slab.

    x_ref: (AUG, tile_B)   augmented input, row ONES_ROW == 1
    w_ref: (W_ROWS, AUG)   packed augmented weight slab
    o_ref: (OUT_SHAPE, tile_B)
    """
    x = x_ref[...]
    h = jnp.maximum(
        jnp.dot(w_ref[0:AUG, :], x, preferred_element_type=jnp.float32), 0.0)
    h = jnp.maximum(
        jnp.dot(w_ref[AUG:2 * AUG, :], h, preferred_element_type=jnp.float32), 0.0)
    # representation head + constant embed branch folded into this single layer
    h = jnp.maximum(
        jnp.dot(w_ref[2 * AUG:3 * AUG, :], h, preferred_element_type=jnp.float32), 0.0)
    o_ref[...] = jnp.dot(w_ref[3 * AUG:W_ROWS, :], h,
                         preferred_element_type=jnp.float32)


# ----------------------------- packing -----------------------------
def pack_params(params):
    """Constant-fold the embed branch + representation head and pack ONE (128, 40) slab.

    Each hidden block is an augmented (40, 40) matrix B such that
        y_aug = B @ x_aug,   y_aug[:32] = W^T x + b,   y_aug[32] = x_aug[32] (the ones row),
    so the bias add is performed by the MXU and the kernel needs no bias input at all.
    Call once; reuse across forwards.
    """
    bw0 = jnp.asarray(params["bw0"], jnp.float32)
    bb0 = jnp.asarray(params["bb0"], jnp.float32)
    bw1 = jnp.asarray(params["bw1"], jnp.float32)
    bb1 = jnp.asarray(params["bb1"], jnp.float32)
    rw = jnp.asarray(params["rw"], jnp.float32)
    rb = jnp.asarray(params["rb"], jnp.float32)
    aw0 = jnp.asarray(params["aw0"], jnp.float32)
    ab0 = jnp.asarray(params["ab0"], jnp.float32)
    lw = jnp.asarray(params["lw"], jnp.float32)
    lb = jnp.asarray(params["lb"], jnp.float32)

    assert bw0.shape == (IN_SHAPE, BASE_H0)
    assert bw1.shape == (BASE_H0, BASE_H1)
    assert rw.shape == (BASE_H1, REPR_SHAPE)
    assert aw0.shape == (REPR_SHAPE + EMBED_SHAPE, APPEND_ACT_H)
    assert lw.shape == (APPEND_ACT_H, OUT_SHAPE)

    embed = jnp.asarray(EMBED_CONST, jnp.float32).reshape(1, EMBED_SHAPE)
    aw_rep = aw0[:REPR_SHAPE, :]
    aw_emb = aw0[REPR_SHAPE:, :]

    # cat([rep, embed]) @ aw0 + ab0 == h @ (rw @ aw_rep) + (rb @ aw_rep + embed @ aw_emb + ab0)
    fused_w = rw @ aw_rep                                # (32, 32)
    fused_b = rb @ aw_rep + embed @ aw_emb + ab0         # (1, 32)

    def aug_block(w, b):
        # w: (in, out), b: (1, out) -> (AUG, AUG) augmented block (ones row preserved).
        in_dim, out_dim = w.shape
        blk = jnp.zeros((AUG, AUG), jnp.float32)
        blk = blk.at[:out_dim, :in_dim].set(w.T)
        blk = blk.at[:out_dim, ONES_ROW].set(b[0])
        blk = blk.at[ONES_ROW, ONES_ROW].set(1.0)        # keep ones row alive through ReLU
        return blk

    w0 = aug_block(bw0, bb0)                             # (40, 40)
    w1 = aug_block(bw1, bb1)                             # (40, 40)
    w2 = aug_block(fused_w, fused_b)                     # (40, 40)
    w3 = jnp.zeros((OUT_SHAPE, AUG), jnp.float32)        # last layer: no ReLU, no ones row
    w3 = w3.at[:, :APPEND_ACT_H].set(lw.T)
    w3 = w3.at[:, ONES_ROW].set(lb[0])

    w_slab = jnp.concatenate([w0, w1, w2, w3], axis=0)   # (128, 40)
    return w_slab


# ----------------------------- forward -----------------------------
@functools.partial(jax.jit, static_argnames=("max_tile_b",))
def embedding_net_v2_forward(x, task_input, w_slab, *, max_tile_b=MAX_TILE_B):
    """Fused forward. Returns (out, None) exactly like the PyTorch module (save_embed=False)."""
    del task_input  # unused by the PyTorch forward pass
    assert x.ndim == 2 and x.shape[1] == IN_SHAPE, x.shape
    dtype = jnp.float32

    B = x.shape[0]
    max_tile_b = _round_up(max_tile_b, LANE)
    b_lane = _round_up(max(B, 1), LANE)                  # batch is the LANE axis now
    if b_lane <= max_tile_b:
        tile_b, n_tiles = b_lane, 1                      # no grid -> zero per-step overhead
    else:
        tile_b = max_tile_b
        n_tiles = pl.cdiv(b_lane, tile_b)
    b_pad = n_tiles * tile_b

    # Feature-major augmented input: rows 0:16 = x^T, rows 16:32 = 0, row 32 = 1, rows 33:40 = 0.
    x_t = x.astype(dtype).T                              # (16, B)
    x_aug = jnp.concatenate([
        jnp.pad(x_t, ((0, 0), (0, b_pad - B))),
        jnp.zeros((ONES_ROW - IN_SHAPE, b_pad), dtype),
        jnp.ones((1, b_pad), dtype),
        jnp.zeros((AUG - ONES_ROW - 1, b_pad), dtype),
    ], axis=0)                                           # (40, b_pad)

    out_shape = jax.ShapeDtypeStruct((OUT_SHAPE, b_pad), dtype)

    if n_tiles == 1:
        vmem = pl.BlockSpec(memory_space=pltpu.MemorySpace.VMEM)
        out = pl.pallas_call(
            _kernel,
            out_shape=out_shape,
            in_specs=[vmem, vmem],
            out_specs=vmem,
        )(x_aug, w_slab)
    else:
        out = pl.pallas_call(
            _kernel,
            out_shape=out_shape,
            grid=(n_tiles,),
            in_specs=[
                pl.BlockSpec((AUG, tile_b), lambda i: (0, i)),       # batch tile (lane-dense)
                pl.BlockSpec((W_ROWS, AUG), lambda i: (0, 0)),       # weight slab stays resident
            ],
            out_specs=pl.BlockSpec((OUT_SHAPE, tile_b), lambda i: (0, i)),
            compiler_params=pltpu.CompilerParams(
                dimension_semantics=("parallel",)),                  # both TCs on v7x
        )(x_aug, w_slab)

    out = out[:, :B].T                                   # (B, OUT_SHAPE), tiny XLA op
    return out, None


# ----------------------------- params / reference -----------------------------
def make_params(key):
    """Deterministic parameter init. Weights are (in, out); biases are (1, out)."""
    def linear(k, fan_in, fan_out, scale=None):
        kw, kb = jax.random.split(k)
        s = scale if scale is not None else 1.0 / jnp.sqrt(fan_in)
        w = jax.random.uniform(kw, (fan_in, fan_out), jnp.float32, -s, s)
        b = jax.random.uniform(kb, (1, fan_out), jnp.float32, -s, s)
        return w, b

    keys = jax.random.split(key, 5)
    params = {}
    params["bw0"], params["bb0"] = linear(keys[0], IN_SHAPE, BASE_H0)
    params["bw1"], params["bb1"] = linear(keys[1], BASE_H0, BASE_H1)
    params["rw"], params["rb"] = linear(keys[2], BASE_H1, REPR_SHAPE)
    params["aw0"], params["ab0"] = linear(keys[3], REPR_SHAPE + EMBED_SHAPE, APPEND_ACT_H)
    # net_last_init_func = uniform_init (small uniform range on the last layer)
    params["lw"], params["lb"] = linear(keys[4], APPEND_ACT_H, OUT_SHAPE, scale=3e-3)
    return params


def reference_forward(x, params):
    """Pure-JAX reference matching the (unfused) PyTorch math."""
    embed = jnp.asarray(EMBED_CONST, jnp.float32).reshape(1, EMBED_SHAPE)
    h = jax.nn.relu(x @ params["bw0"] + params["bb0"])
    h = jax.nn.relu(h @ params["bw1"] + params["bb1"])
    rep = h @ params["rw"] + params["rb"]
    cat = jnp.concatenate(
        [rep, jnp.broadcast_to(embed, (rep.shape[0], EMBED_SHAPE))], axis=-1)
    a = jax.nn.relu(cat @ params["aw0"] + params["ab0"])
    return a @ params["lw"] + params["lb"]


if __name__ == "__main__":
    key = jax.random.PRNGKey(0)
    kx, kt, kp = jax.random.split(key, 3)

    params = make_params(kp)
    w_slab = pack_params(params)                 # constant-fold + pack once

    # ---- torch-faithful B == 1 case (no grid, single lane tile) ----
    x = jax.random.normal(kx, (BATCH, IN_SHAPE), dtype=jnp.float32)
    task_input = jax.random.normal(kt, (BATCH, TASK_IN), dtype=jnp.float32)
    out, embed_ret = embedding_net_v2_forward(x, task_input, w_slab)
    out = jax.block_until_ready(out)
    assert out.shape == (BATCH, OUT_SHAPE)
    assert embed_ret is None
    ref = reference_forward(x, params)
    assert jnp.allclose(out, ref, rtol=1e-4, atol=1e-4), (out, ref)

    # ---- batched case, non-multiple-of-128 batch (single tile, lane padding) ----
    B_MED = 300
    xb = jax.random.normal(kx, (B_MED, IN_SHAPE), dtype=jnp.float32)
    outb, _ = embedding_net_v2_forward(xb, task_input, w_slab)
    outb = jax.block_until_ready(outb)
    assert outb.shape == (B_MED, OUT_SHAPE)
    refb = reference_forward(xb, params)
    assert jnp.allclose(outb, refb, rtol=1e-4, atol=1e-4)

    # ---- grid path: force small tiles so the 1-D "parallel" grid is exercised ----
    outg, _ = embedding_net_v2_forward(xb, task_input, w_slab, max_tile_b=128)
    outg = jax.block_until_ready(outg)
    assert outg.shape == (B_MED, OUT_SHAPE)
    assert jnp.allclose(outg, refb, rtol=1e-4, atol=1e-4)

    print("KERNEL_OK")
</pallas_src>

<mosaic_0001>
module attributes {stable_mosaic.version = 11 : i64} {
  func.func @_kernel(%arg0: memref<40x128xf32, #tpu.memory_space<vmem>>, %arg1: memref<128x40xf32, #tpu.memory_space<vmem>>, %arg2: memref<8x128xf32, #tpu.memory_space<vmem>>) attributes {dimension_semantics = [], scalar_prefetch = 0 : i64, scratch_operands = 0 : i64, tpu.core_type = #tpu.core_type<tc>} {
    %c0 = arith.constant 0 : index
    %c0_0 = arith.constant 0 : index
    %0 = vector.load %arg0[%c0, %c0_0] : memref<40x128xf32, #tpu.memory_space<vmem>>, vector<40x128xf32>
    %c0_1 = arith.constant 0 : index
    %c0_2 = arith.constant 0 : index
    %1 = vector.load %arg1[%c0_1, %c0_2] : memref<128x40xf32, #tpu.memory_space<vmem>>, vector<40x40xf32>
    %cst = arith.constant dense<0.000000e+00> : vector<40x128xf32>
    %2 = tpu.matmul %1, %0, %cst {dimension_numbers = #tpu.dot_dimension_numbers<[1], [0], [0], [1], [0, 0, 1, 1], [], []>} : vector<40x40xf32>, vector<40x128xf32>, vector<40x128xf32> -> vector<40x128xf32>
    %cst_3 = arith.constant 0.000000e+00 : f32
    %3 = vector.broadcast %cst_3 : f32 to vector<40x128xf32>
    %4 = arith.maximumf %2, %3 : vector<40x128xf32>
    %c40 = arith.constant 40 : index
    %c0_4 = arith.constant 0 : index
    %5 = vector.load %arg1[%c40, %c0_4] : memref<128x40xf32, #tpu.memory_space<vmem>>, vector<40x40xf32>
    %cst_5 = arith.constant dense<0.000000e+00> : vector<40x128xf32>
    %6 = tpu.matmul %5, %4, %cst_5 {dimension_numbers = #tpu.dot_dimension_numbers<[1], [0], [0], [1], [0, 0, 1, 1], [], []>} : vector<40x40xf32>, vector<40x128xf32>, vector<40x128xf32> -> vector<40x128xf32>
    %cst_6 = arith.constant 0.000000e+00 : f32
    %7 = vector.broadcast %cst_6 : f32 to vector<40x128xf32>
    %8 = arith.maximumf %6, %7 : vector<40x128xf32>
    %c80 = arith.constant 80 : index
    %c0_7 = arith.constant 0 : index
    %9 = vector.load %arg1[%c80, %c0_7] : memref<128x40xf32, #tpu.memory_space<vmem>>, vector<40x40xf32>
    %cst_8 = arith.constant dense<0.000000e+00> : vector<40x128xf32>
    %10 = tpu.matmul %9, %8, %cst_8 {dimension_numbers = #tpu.dot_dimension_numbers<[1], [0], [0], [1], [0, 0, 1, 1], [], []>} : vector<40x40xf32>, vector<40x128xf32>, vector<40x128xf32> -> vector<40x128xf32>
    %cst_9 = arith.constant 0.000000e+00 : f32
    %11 = vector.broadcast %cst_9 : f32 to vector<40x128xf32>
    %12 = arith.maximumf %10, %11 : vector<40x128xf32>
    %c120 = arith.constant 120 : index
    %c0_10 = arith.constant 0 : index
    %13 = vector.load %arg1[%c120, %c0_10] : memref<128x40xf32, #tpu.memory_space<vmem>>, vector<8x40xf32>
    %cst_11 = arith.constant dense<0.000000e+00> : vector<8x128xf32>
    %14 = tpu.matmul %13, %12, %cst_11 {dimension_numbers = #tpu.dot_dimension_numbers<[1], [0], [0], [1], [0, 0, 1, 1], [], []>} : vector<8x40xf32>, vector<40x128xf32>, vector<8x128xf32> -> vector<8x128xf32>
    %c0_12 = arith.constant 0 : index
    %c0_13 = arith.constant 0 : index
    %15 = vector.load %arg2[%c0_12, %c0_13] : memref<8x128xf32, #tpu.memory_space<vmem>>, vector<8x128xf32>
    tpu.vector_store %arg2[%c0_12, %c0_13], %14 {strides = array<i32>} : memref<8x128xf32, #tpu.memory_space<vmem>>, vector<8x128xf32>,
    return
  }
}

</mosaic_0001>

<bundles_post_ra>
// kernel: embedding_net_v2_forward.1
= control target key start
LH: loop header
LB: loop body
LE: loop exit
PB: predicated region body
PF: predicated region fallthrough
CT: control target
= control target key end

     0   :  { %v614_v0 = vmov 0.0|0.0   ;;  %vm615_vm0 = vmmov 0   ;;  %v616_v6 = vmov 0.0   ;;  %vm21_vm1 = vcmask 326656   ;;  %s761_s0 = inlined_call_operand.vmem [shape: f32[40,128], index: 0, kind: input, shape index: {}]   ;;  %s762_s1 = inlined_call_operand.vmem [shape: f32[128,40], index: 1, kind: input, shape index: {}]   ;;  %s763_s2 = inlined_call_operand.vmem [shape: f32[8,128], index: 2, kind: output, shape index: {}]  }
   0x1   :  { %581 = vmatprep.subr.bf16.mxu0 %v614_v0  ;;  %v11_v1 = vld [vmem:[%s761_s0] sm:$0xff]  ;;  %v12_v2 = vld [vmem:[%s761_s0 + $0x8] sm:$0xff]  ;;  %v13_v3 = vld [vmem:[%s761_s0 + $0x10] sm:$0xff]  ;;  %605 = vmatprep.subr.bf16.mxu1 %v614_v0 }
   0x2   :  { %v582_v4 = vpack.c.bf16 %v12_v2, %v11_v1  ;;  %v14_v5 = vld [vmem:[%s761_s0 + $0x18] sm:$0xff]  ;;  %503 = vmatprep.mubr.msk.f32.mxu0 %vm615_vm0, %v616_v6  ;;  %512 = vmatprep.mubr.msk.f32.mxu1 %vm615_vm0, %v616_v6  ;;  %v15_v8 = vld [vmem:[%s761_s0 + $0x20] sm:$0xff]  ;;  %v17_v11 = vld [vmem:[%s762_s1 + $0x8] sm:$0xff] }
   0x3   :  { %v585_v7 = vpack.c.bf16 %v14_v5, %v13_v3  ;;  %v16_v9 = vld [vmem:[%s762_s1] sm:$0xff]  ;;  %v19_v10 = vld [vmem:[%s762_s1 + $0x18] sm:$0xff]  ;;  %v18_v13 = vld [vmem:[%s762_s1 + $0x10] sm:$0xff] }
   0x4   :  { %583 = vmatpush3.bf16.msra.mxu0 %v582_v4  ;;  %608 = vmatpush3.bf16.msra.mxu1 %v582_v4  ;;  %v20_v12 = vld [vmem:[%s762_s1 + $0x20] sm:$0xff]  ;;  %v132_v31 = vld [vmem:[%s762_s1 + $0x28] sm:$0xff]  ;;  %v133_v32 = vld [vmem:[%s762_s1 + $0x30] sm:$0xff] }
   0x5   :  { %584 = vmatprep.subr.bf16.mxu0 %v614_v0  ;;  %606 = vmatprep.subr.bf16.mxu1 %v614_v0  ;;  %v134_v33 = vld [vmem:[%s762_s1 + $0x38] sm:$0xff]  ;;  %v135_v34 = vld [vmem:[%s762_s1 + $0x40] sm:$0xff]  ;;  %v136_v35 = vld [vmem:[%s762_s1 + $0x48] sm:$0xff] }
   0x6   :  { %v247_v53 = vld [vmem:[%s762_s1 + $0x50] sm:$0xff]  ;;  %v248_v54 = vld [vmem:[%s762_s1 + $0x58] sm:$0xff]  ;;  %v249_v55 = vld [vmem:[%s762_s1 + $0x60] sm:$0xff] }
   0x7   :  { %v250_v56 = vld [vmem:[%s762_s1 + $0x68] sm:$0xff]  ;;  %v251_v57 = vld [vmem:[%s762_s1 + $0x70] sm:$0xff] }
   0x8   :  { %586 = vmatpush3.bf16.msra.mxu0 %v585_v7  ;;  %609 = vmatpush3.bf16.msra.mxu1 %v585_v7 }
   0x9   :  { %501 = vmatprep.subr.mxu0 %v616_v6  ;;  %607 = vmatprep.subr.mxu1 %v616_v6 }
   0xc   :  { %502 = vmatpush3.msra.mxu0 %v15_v8  ;;  %610 = vmatpush3.msra.mxu1 %v15_v8 }
   0xd   :  { %504 = vmatmul.mubr.msk.f32.vlgmr.msra.gmra.mrb[0].mxu0 %vm21_vm1, %v16_v9  ;;  %513 = vmatmul.mubr.msk.f32.vlgmr.msra.gmra.mrb[0].mxu1 %vm21_vm1, %v19_v10 }
   0xe   :  { %506 = vmatprep.mubr.msk.f32.mxu0 %vm615_vm0, %v616_v6  ;;  %515 = vmatprep.mubr.msk.f32.mxu1 %vm615_vm0, %v616_v6 }
   0xf   :  { %587 = vmatprep.subr.bf16.mxu1 %v614_v0  ;;  %593 = vmatprep.subr.bf16.mxu0 %v614_v0 }
  0x11   :  { %507 = vmatmul.mubr.msk.f32.gmra.mrb[2].mxu0 %vm21_vm1, %v17_v11  ;;  %516 = vmatmul.mubr.msk.f32.gmra.mrb[2].mxu1 %vm21_vm1, %v20_v12 }
  0x12   :  { %509 = vmatprep.mubr.msk.f32.mxu0 %vm615_vm0, %v616_v6  ;;  %528 = vmatprep.mubr.msk.f32.mxu1 %vm615_vm0, %v616_v6 }
  0x15   :  { %510 = vmatmul.mubr.msk.f32.gmra.mrb[4].mxu0 %vm21_vm1, %v18_v13  ;;  %v362_v13 = vld [vmem:[%s762_s1 + $0x78] sm:$0xff] }
  0x16   :  { %553 = vmatprep.mubr.msk.f32.mxu0 %vm615_vm0, %v616_v6 }
  0xe0   :  { %v103_v14 = vpop.f32.mrb[0].mxu0  ;;  %v118_v15 = vpop.f32.mrb[0].mxu1 }
  0xe1   :  { %v505_v16 = vpop.f32.mrb[1].mxu0  ;;  %v514_v17 = vpop.f32.mrb[1].mxu1  ;;  %v127_v20 = vmax.f32 %v103_v14, 0.0  ;;  %v130_v25 = vmax.f32 %v118_v15, 0.0 }
  0xe4   :  { %v108_v18 = vpop.f32.mrb[2].mxu0  ;;  %v123_v19 = vpop.f32.mrb[2].mxu1 }
  0xe5   :  { %v128_v21 = vmax.f32 %v108_v18, 0.0  ;;  %v508_v22 = vpop.f32.mrb[3].mxu0  ;;  %v517_v23 = vpop.f32.mrb[3].mxu1  ;;  %v131_v30 = vmax.f32 %v123_v19, 0.0 }
  0xe7   :  { %v588_v24 = vpack.c.bf16 %v128_v21, %v127_v20 }
  0xe8   :  { %v113_v26 = vpop.f32.mrb[4].mxu0 }
  0xe9   :  { %v129_v27 = vmax.f32 %v113_v26, 0.0  ;;  %v511_v28 = vpop.f32.mrb[5].mxu0  ;;  %589 = vmatpush3.bf16.msra.mxu1 %v588_v24 }
  0xea   :  { %590 = vmatprep.subr.bf16.mxu1 %v614_v0 }
  0xeb   :  { %v591_v29 = vpack.c.bf16 %v130_v25, %v129_v27 }
  0xed   :  { %592 = vmatpush3.bf16.msra.mxu1 %v591_v29 }
  0xee   :  { %526 = vmatprep.subr.mxu1 %v616_v6 }
  0xf1   :  { %527 = vmatpush3.msra.mxu1 %v131_v30 }
  0xf2   :  { %529 = vmatmul.mubr.msk.f32.vlgmr.msra.gmra.mrb[4].mxu1 %vm21_vm1, %v132_v31  ;;  %599 = vmatprep.subr.bf16.mxu1 %v614_v0 }
  0xf3   :  { %531 = vmatprep.mubr.msk.f32.mxu1 %vm615_vm0, %v616_v6 }
  0xf6   :  { %532 = vmatmul.mubr.msk.f32.gmra.mrb[6].mxu1 %vm21_vm1, %v133_v32 }
  0xf7   :  { %534 = vmatprep.mubr.msk.f32.mxu1 %vm615_vm0, %v616_v6 }
  0xfa   :  { %535 = vmatmul.mubr.msk.f32.gmra.mrb[8].mxu1 %vm21_vm1, %v134_v33 }
  0xfb   :  { %537 = vmatprep.mubr.msk.f32.mxu1 %vm615_vm0, %v616_v6 }
  0xfe   :  { %538 = vmatmul.mubr.msk.f32.gmra.mrb[10].mxu1 %vm21_vm1, %v135_v34 }
  0xff   :  { %540 = vmatprep.mubr.msk.f32.mxu1 %vm615_vm0, %v616_v6 }
 0x102   :  { %541 = vmatmul.mubr.msk.f32.gmra.mrb[12].mxu1 %vm21_vm1, %v136_v35 }
 0x103   :  { %578 = vmatprep.mubr.msk.f32.mxu1 %vm615_vm0, %v616_v6 }
 0x1c5   :  { %v218_v36 = vpop.f32.mrb[4].mxu1 }
 0x1c6   :  { %v530_v37 = vpop.f32.mrb[5].mxu1  ;;  %v242_v39 = vmax.f32 %v218_v36, 0.0 }
 0x1c9   :  { %v223_v38 = vpop.f32.mrb[6].mxu1 }
 0x1ca   :  { %v243_v40 = vmax.f32 %v223_v38, 0.0  ;;  %v533_v41 = vpop.f32.mrb[7].mxu1 }
 0x1cc   :  { %v594_v42 = vpack.c.bf16 %v243_v40, %v242_v39 }
 0x1cd   :  { %v228_v43 = vpop.f32.mrb[8].mxu1 }
 0x1ce   :  { %v536_v44 = vpop.f32.mrb[9].mxu1  ;;  %595 = vmatpush3.bf16.msra.mxu0 %v594_v42  ;;  %v244_v46 = vmax.f32 %v228_v43, 0.0 }
 0x1cf   :  { %596 = vmatprep.subr.bf16.mxu0 %v614_v0 }
 0x1d1   :  { %v233_v45 = vpop.f32.mrb[10].mxu1 }
 0x1d2   :  { %v245_v47 = vmax.f32 %v233_v45, 0.0  ;;  %v539_v48 = vpop.f32.mrb[11].mxu1 }
 0x1d4   :  { %v597_v49 = vpack.c.bf16 %v245_v47, %v244_v46 }
 0x1d5   :  { %v238_v50 = vpop.f32.mrb[12].mxu1 }
 0x1d6   :  { %v246_v51 = vmax.f32 %v238_v50, 0.0  ;;  %598 = vmatpush3.bf16.msra.mxu0 %v597_v49  ;;  %v542_v52 = vpop.f32.mrb[13].mxu1 }
 0x1d7   :  { %551 = vmatprep.subr.mxu0 %v616_v6 }
 0x1da   :  { %552 = vmatpush3.msra.mxu0 %v246_v51 }
 0x1db   :  { %554 = vmatmul.mubr.msk.f32.vlgmr.msra.gmra.mrb[6].mxu0 %vm21_vm1, %v247_v53 }
 0x1dc   :  { %556 = vmatprep.mubr.msk.f32.mxu0 %vm615_vm0, %v616_v6 }
 0x1df   :  { %557 = vmatmul.mubr.msk.f32.gmra.mrb[8].mxu0 %vm21_vm1, %v248_v54 }
 0x1e0   :  { %559 = vmatprep.mubr.msk.f32.mxu0 %vm615_vm0, %v616_v6 }
 0x1e3   :  { %560 = vmatmul.mubr.msk.f32.gmra.mrb[10].mxu0 %vm21_vm1, %v249_v55 }
 0x1e4   :  { %562 = vmatprep.mubr.msk.f32.mxu0 %vm615_vm0, %v616_v6 }
 0x1e7   :  { %563 = vmatmul.mubr.msk.f32.gmra.mrb[12].mxu0 %vm21_vm1, %v250_v56 }
 0x1e8   :  { %565 = vmatprep.mubr.msk.f32.mxu0 %vm615_vm0, %v616_v6 }
 0x1eb   :  { %566 = vmatmul.mubr.msk.f32.gmra.mrb[14].mxu0 %vm21_vm1, %v251_v57 }
 0x2ae   :  { %v333_v58 = vpop.f32.mrb[6].mxu0 }
 0x2af   :  { %v555_v59 = vpop.f32.mrb[7].mxu0  ;;  %v357_v61 = vmax.f32 %v333_v58, 0.0 }
 0x2b2   :  { %v338_v60 = vpop.f32.mrb[8].mxu0 }
 0x2b3   :  { %v358_v62 = vmax.f32 %v338_v60, 0.0  ;;  %v558_v63 = vpop.f32.mrb[9].mxu0 }
 0x2b5   :  { %v600_v1 = vpack.c.bf16 %v358_v62, %v357_v61 }
 0x2b6   :  { %v343_v2 = vpop.f32.mrb[10].mxu0 }
 0x2b7   :  { %v561_v3 = vpop.f32.mrb[11].mxu0  ;;  %601 = vmatpush3.bf16.msra.mxu1 %v600_v1  ;;  %v359_v5 = vmax.f32 %v343_v2, 0.0 }
 0x2b8   :  { %602 = vmatprep.subr.bf16.mxu1 %v614_v0 }
 0x2ba   :  { %v348_v4 = vpop.f32.mrb[12].mxu0 }
 0x2bb   :  { %v360_v7 = vmax.f32 %v348_v4, 0.0  ;;  %v564_v8 = vpop.f32.mrb[13].mxu0 }
 0x2bd   :  { %v603_v9 = vpack.c.bf16 %v360_v7, %v359_v5 }
 0x2be   :  { %v353_v10 = vpop.f32.mrb[14].mxu0 }
 0x2bf   :  { %604 = vmatpush3.bf16.msra.mxu1 %v603_v9  ;;  %v361_v11 = vmax.f32 %v353_v10, 0.0  ;;  %v567_v12 = vpop.f32.mrb[15].mxu0 }
 0x2c0   :  { %576 = vmatprep.subr.mxu1 %v616_v6 }
 0x2c3   :  { %577 = vmatpush3.msra.mxu1 %v361_v11 }
 0x2c4   :  { %579 = vmatmul.mubr.msk.f32.vlgmr.msra.gmra.mrb[14].mxu1 %vm21_vm1, %v362_v13 }
 0x397   :  { %v432_v14 = vpop.f32.mrb[14].mxu1 }
 0x398   :  { %436 = vst [vmem:[%s763_s2] sm:$0xff] %v432_v14  ;;  %v580_v0 = vpop.f32.mrb[15].mxu1 }

</bundles_post_ra>
